<compile_context>
chip_gen: v6e
topology: v6e:2x2x1
jax: 0.10.0
libtpu: 0.0.40
codegen_flags: <defaults>
</compile_context>

<pallas_src>
import math

import jax
import jax.numpy as jnp
from jax.experimental import pallas as pl
from jax.experimental.pallas import tpu as pltpu

LANE = 128                 # pad feature dims to lane width
MIB = 1024 * 1024


def _round_up(x, m):
    return (x + m - 1) // m * m


def _cdiv(a, b):
    return (a + b - 1) // b


def _vmem_limit_bytes():
    """Generation-aware VMEM limit.

    128 MiB parts (v5e/v6e) -> ~100 MiB, 64 MiB parts (v7x) -> ~48 MiB.
    Falls back to a conservative 48 MiB if the hardware query fails.
    """
    cap = None
    try:
        cap = int(pltpu.get_tpu_info().vmem_capacity_bytes)
    except Exception:
        cap = None
    if not cap or cap <= 0:
        cap = 64 * MIB
    # leave headroom for compiler-internal scratch we do not model
    return max(cap * 3 // 4, cap - 28 * MIB)


def _default_compute_dtype(x_dtype):
    """bf16 (with f32 MXU accumulation) by default on v5e, else input dtype."""
    try:
        kind = jax.devices()[0].device_kind.lower()
        if "v5e" in kind or "v5 lite" in kind or "v5lite" in kind:
            return jnp.bfloat16
    except Exception:
        pass
    return x_dtype


def _choose_batch_tiling(B, sub, tb_request, rows_budget):
    """Pick (batch_tile, padded_batch) given sublane width & VMEM row budget."""
    B_sub = _round_up(B, sub)
    # Largest tile the VMEM budget (and the caller's cap) permits.
    tb_fit = max(sub, min(tb_request, rows_budget))
    if tb_fit >= 256:
        tb_fit = tb_fit // 256 * 256       # full-height MXU passes
    else:
        tb_fit = max(sub, tb_fit // sub * sub)
    n = _cdiv(B_sub, tb_fit)
    # Megacore: v7x has 2 TensorCores -- make sure the "parallel" batch axis
    # has >=2 grid steps so both cores get work.  Costs ~0.35us on 1-core
    # parts, negligible.
    if n == 1 and B_sub >= 2 * sub:
        n = 2
    # Balanced tiles: padding waste capped at one sublane group per tile
    # rather than a full tile (e.g. B=260 no longer computes 512 rows).
    tb_eff = _round_up(_cdiv(B_sub, n), sub)
    if tb_eff > 256:
        tb_eff = _round_up(tb_eff, 256)
    return tb_eff, n * tb_eff


def homogeneous_deep_kernel(x_ref, w1_ref, w2_ref, wo_ref, o_ref):
    """Fused depth-2 MLP on one batch tile.

    Weights arrive pre-transposed to (in, out).  All matmuls accumulate in
    f32 on the MXU; ReLUs run on the f32 accumulator (free VPU filler) and
    activations are cast back to the compute dtype only to feed the next
    MXU pass.
    """
    cdt = x_ref.dtype
    h = jnp.dot(x_ref[...], w1_ref[...], preferred_element_type=jnp.float32)
    h = jnp.maximum(h, 0.0).astype(cdt)
    h = jnp.dot(h, w2_ref[...], preferred_element_type=jnp.float32)
    h = jnp.maximum(h, 0.0).astype(cdt)
    out = jnp.dot(h, wo_ref[...], preferred_element_type=jnp.float32)
    o_ref[...] = out.astype(o_ref.dtype)


def homogeneous_deep(x, w1, w2, wo, *, tb=1024, compute_dtype=None,
                     out_dtype=None):
    """relu(relu(x @ w1.T) @ w2.T) @ wo.T with PyTorch-layout weights."""
    B, in_dim = x.shape
    hidden = w1.shape[0]
    out_dim = wo.shape[0]
    assert w1.shape == (hidden, in_dim)
    assert w2.shape == (hidden, hidden)
    assert wo.shape == (out_dim, hidden)

    if compute_dtype is None:
        compute_dtype = _default_compute_dtype(x.dtype)
    if out_dtype is None:
        out_dtype = x.dtype
    compute_dtype = jnp.dtype(compute_dtype)
    out_dtype = jnp.dtype(out_dtype)
    itemsize = compute_dtype.itemsize
    out_itemsize = out_dtype.itemsize
    # bf16 packs 16 rows per sublane tile; f32 packs 8.
    sub = 16 if itemsize < 4 else 8

    # Pad feature dims to the lane width for full MXU passes + unmasked stores.
    in_p = _round_up(in_dim, LANE)
    hid_p = _round_up(hidden, LANE)
    out_p = _round_up(out_dim, LANE)

    # ---------- VMEM budget -> batch tile ----------
    vmem_limit = _vmem_limit_bytes()
    weight_bytes = (in_p * hid_p + hid_p * hid_p + hid_p * out_p) * itemsize
    # Bytes per batch row held concurrently inside one grid step: x tile
    # (double-buffered), out tile (double-buffered) + its f32 pre-cast result,
    # and two (row, hid) f32 intermediates plus their compute-dtype casts.
    row_bytes = (2 * in_p * itemsize
                 + 2 * out_p * out_itemsize + out_p * 4
                 + hid_p * (2 * 4 + 2 * itemsize))
    usable = vmem_limit - weight_bytes - 4 * MIB
    if usable < sub * row_bytes:
        # TODO(synk): add a K-tiled (hidden-split) grid axis with an f32 VMEM
        # accumulator + pl.when init/finalize so hidden sizes whose resident
        # W2 exceeds VMEM (notably on v7x's 64 MiB) can still run.
        raise ValueError(
            f"hidden={hidden} needs ~{weight_bytes / MIB:.1f} MiB of resident "
            f"weights; does not fit the {vmem_limit / MIB:.0f} MiB VMEM budget")
    rows_budget = usable // row_bytes

    tb_eff, B_p = _choose_batch_tiling(B, sub, max(sub, int(tb)), rows_budget)
    grid = (B_p // tb_eff,)

    # ---------- pad / cast inputs (skip pads when already aligned) ----------
    def _prep(a, rows, cols, dtype):
        a = a.astype(dtype)
        pr, pc = rows - a.shape[0], cols - a.shape[1]
        if pr or pc:
            a = jnp.pad(a, ((0, pr), (0, pc)))
        return a

    xp = _prep(x, B_p, in_p, compute_dtype)
    # One-time transpose (out,in) -> (in,out) + pad + cast, done by XLA
    # outside the kernel.
    w1t = _prep(w1.T, in_p, hid_p, compute_dtype)
    w2t = _prep(w2.T, hid_p, hid_p, compute_dtype)
    wot = _prep(wo.T, hid_p, out_p, compute_dtype)

    # Weights are grid-invariant (index_map always (0,0)): single-buffer them
    # so only one VMEM copy of each weight is allocated.
    # TODO(synk): for the small-batch (weight-DMA-bound) regime, stream the
    # weights along the contraction dim with pltpu.emit_pipeline so compute
    # overlaps the weight DMAs instead of fully serializing on step 0.
    def w_spec(rows, cols):
        return pl.BlockSpec((rows, cols), lambda i: (0, 0),
                            pipeline_mode=pl.Buffered(1))

    cost = pl.CostEstimate(
        flops=2 * B_p * (in_p * hid_p + hid_p * hid_p + hid_p * out_p),
        transcendentals=0,
        bytes_accessed=((xp.size + w1t.size + w2t.size + wot.size) * itemsize
                        + B_p * out_p * out_itemsize),
    )

    out_padded = pl.pallas_call(
        homogeneous_deep_kernel,
        out_shape=jax.ShapeDtypeStruct((B_p, out_p), out_dtype),
        grid_spec=pltpu.PrefetchScalarGridSpec(
            num_scalar_prefetch=0,
            grid=grid,
            in_specs=[
                pl.BlockSpec((tb_eff, in_p), lambda i: (i, 0)),
                w_spec(in_p, hid_p),
                w_spec(hid_p, hid_p),
                w_spec(hid_p, out_p),
            ],
            out_specs=pl.BlockSpec((tb_eff, out_p), lambda i: (i, 0)),
        ),
        compiler_params=pltpu.CompilerParams(
            dimension_semantics=("parallel",),
            vmem_limit_bytes=vmem_limit,
        ),
        cost_estimate=cost,
    )(xp, w1t, w2t, wot)

    # Skip the post-kernel slice (a full extra HBM copy) when nothing was padded.
    if B_p == B and out_p == out_dim:
        return out_padded
    return out_padded[:B, :out_dim]


def init_params(key, in_dim, hidden_dim, out_dim, scale=1.0):
    # Matches HomogeneousDeep.__init__ shapes/init (bias=False everywhere).
    stdv = 1.0 / math.sqrt(hidden_dim)
    k1, k2, k3 = jax.random.split(key, 3)
    w1 = jax.random.uniform(k1, (hidden_dim, in_dim), jnp.float32,
                            minval=-scale * stdv, maxval=scale * stdv)
    w2 = jax.random.uniform(k2, (hidden_dim, hidden_dim), jnp.float32,
                            minval=-scale * stdv, maxval=scale * stdv)
    wo = jax.random.uniform(k3, (out_dim, hidden_dim), jnp.float32,
                            minval=-scale * stdv, maxval=scale * stdv)
    return w1, w2, wo


def reference(x, w1, w2, wo):
    h = jnp.maximum(x @ w1.T, 0.0)
    h = jnp.maximum(h @ w2.T, 0.0)
    return h @ wo.T


if __name__ == "__main__":
    # Small shapes consistent with the module (depth=2 MLP, no bias).
    B, in_dim, hidden_dim, out_dim = 16, 32, 32, 10

    key = jax.random.PRNGKey(0)
    kx, kp = jax.random.split(key)
    x = jax.random.normal(kx, (B, in_dim), jnp.float32)
    w1, w2, wo = init_params(kp, in_dim, hidden_dim, out_dim, scale=1.0)

    ref = reference(x, w1, w2, wo)

    # f32 compute path (zero padding is exact -> tight tolerance).
    out_f32 = jax.block_until_ready(
        homogeneous_deep(x, w1, w2, wo, compute_dtype=jnp.float32))
    assert out_f32.shape == (B, out_dim)
    assert jnp.allclose(out_f32, ref, atol=1e-5, rtol=1e-5)

    # bf16 compute path (f32 accumulation): 2x MXU throughput, half the
    # weight VMEM; checked with bf16-appropriate tolerance.
    out_bf16 = jax.block_until_ready(
        homogeneous_deep(x, w1, w2, wo, compute_dtype=jnp.bfloat16))
    assert out_bf16.shape == (B, out_dim)
    assert jnp.allclose(out_bf16.astype(jnp.float32), ref,
                        atol=5e-2, rtol=5e-2)

    # Ragged batch exercising balanced tiling + >=2 grid steps (megacore path).
    B2 = 37
    x2 = jax.random.normal(jax.random.PRNGKey(1), (B2, in_dim), jnp.float32)
    out2 = jax.block_until_ready(
        homogeneous_deep(x2, w1, w2, wo, compute_dtype=jnp.float32))
    assert out2.shape == (B2, out_dim)
    assert jnp.allclose(out2, reference(x2, w1, w2, wo), atol=1e-5, rtol=1e-5)

    print("KERNEL_OK")
</pallas_src>

<mosaic_0001>
module attributes {stable_mosaic.version = 11 : i64} {
  func.func @homogeneous_deep_kernel(%arg0: i32, %arg1: memref<8x128xf32, #tpu.memory_space<vmem>>, %arg2: memref<128x128xf32, #tpu.memory_space<vmem>>, %arg3: memref<128x128xf32, #tpu.memory_space<vmem>>, %arg4: memref<128x128xf32, #tpu.memory_space<vmem>>, %arg5: memref<8x128xf32, #tpu.memory_space<vmem>>) attributes {dimension_semantics = [#tpu.dimension_semantics<parallel>], iteration_bounds = array<i64: 2>, scalar_prefetch = 0 : i64, scratch_operands = 0 : i64, tpu.core_type = #tpu.core_type<tc>, window_params = [{transform_indices = @transform_0, window_bounds = array<i64: 8, 128>}, {pipeline_mode = #tpu.pipeline_mode<synchronous>, transform_indices = @transform_1, window_bounds = array<i64: 128, 128>}, {pipeline_mode = #tpu.pipeline_mode<synchronous>, transform_indices = @transform_2, window_bounds = array<i64: 128, 128>}, {pipeline_mode = #tpu.pipeline_mode<synchronous>, transform_indices = @transform_3, window_bounds = array<i64: 128, 128>}, {transform_indices = @transform_4, window_bounds = array<i64: 8, 128>}]} {
    %c0 = arith.constant 0 : index
    %c0_0 = arith.constant 0 : index
    %0 = vector.load %arg1[%c0, %c0_0] : memref<8x128xf32, #tpu.memory_space<vmem>>, vector<8x128xf32>
    %c0_1 = arith.constant 0 : index
    %c0_2 = arith.constant 0 : index
    %1 = vector.load %arg2[%c0_1, %c0_2] : memref<128x128xf32, #tpu.memory_space<vmem>>, vector<128x128xf32>
    %cst = arith.constant dense<0.000000e+00> : vector<8x128xf32>
    %2 = tpu.matmul %0, %1, %cst {dimension_numbers = #tpu.dot_dimension_numbers<[1], [0], [0], [1], [0, 0, 1, 1], [], []>} : vector<8x128xf32>, vector<128x128xf32>, vector<8x128xf32> -> vector<8x128xf32>
    %cst_3 = arith.constant 0.000000e+00 : f32
    %3 = vector.broadcast %cst_3 : f32 to vector<8x128xf32>
    %4 = arith.maximumf %2, %3 : vector<8x128xf32>
    %c0_4 = arith.constant 0 : index
    %c0_5 = arith.constant 0 : index
    %5 = vector.load %arg3[%c0_4, %c0_5] : memref<128x128xf32, #tpu.memory_space<vmem>>, vector<128x128xf32>
    %cst_6 = arith.constant dense<0.000000e+00> : vector<8x128xf32>
    %6 = tpu.matmul %4, %5, %cst_6 {dimension_numbers = #tpu.dot_dimension_numbers<[1], [0], [0], [1], [0, 0, 1, 1], [], []>} : vector<8x128xf32>, vector<128x128xf32>, vector<8x128xf32> -> vector<8x128xf32>
    %cst_7 = arith.constant 0.000000e+00 : f32
    %7 = vector.broadcast %cst_7 : f32 to vector<8x128xf32>
    %8 = arith.maximumf %6, %7 : vector<8x128xf32>
    %c0_8 = arith.constant 0 : index
    %c0_9 = arith.constant 0 : index
    %9 = vector.load %arg4[%c0_8, %c0_9] : memref<128x128xf32, #tpu.memory_space<vmem>>, vector<128x128xf32>
    %cst_10 = arith.constant dense<0.000000e+00> : vector<8x128xf32>
    %10 = tpu.matmul %8, %9, %cst_10 {dimension_numbers = #tpu.dot_dimension_numbers<[1], [0], [0], [1], [0, 0, 1, 1], [], []>} : vector<8x128xf32>, vector<128x128xf32>, vector<8x128xf32> -> vector<8x128xf32>
    %c0_11 = arith.constant 0 : index
    %c0_12 = arith.constant 0 : index
    %11 = vector.load %arg5[%c0_11, %c0_12] : memref<8x128xf32, #tpu.memory_space<vmem>>, vector<8x128xf32>
    tpu.vector_store %arg5[%c0_11, %c0_12], %10 {strides = array<i32>} : memref<8x128xf32, #tpu.memory_space<vmem>>, vector<8x128xf32>,
    return
  }
  func.func @transform_0(%arg0: i32) -> (i32, i32) {
    %c0_i32 = arith.constant 0 : i32
    %c0_i32_0 = arith.constant 0 : i32
    return %arg0, %c0_i32 : i32, i32
  }
  func.func @transform_1(%arg0: i32) -> (i32, i32) {
    %c0_i32 = arith.constant 0 : i32
    %c0_i32_0 = arith.constant 0 : i32
    %c0_i32_1 = arith.constant 0 : i32
    return %c0_i32, %c0_i32_0 : i32, i32
  }
  func.func @transform_2(%arg0: i32) -> (i32, i32) {
    %c0_i32 = arith.constant 0 : i32
    %c0_i32_0 = arith.constant 0 : i32
    %c0_i32_1 = arith.constant 0 : i32
    return %c0_i32, %c0_i32_0 : i32, i32
  }
  func.func @transform_3(%arg0: i32) -> (i32, i32) {
    %c0_i32 = arith.constant 0 : i32
    %c0_i32_0 = arith.constant 0 : i32
    %c0_i32_1 = arith.constant 0 : i32
    return %c0_i32, %c0_i32_0 : i32, i32
  }
  func.func @transform_4(%arg0: i32) -> (i32, i32) {
    %c0_i32 = arith.constant 0 : i32
    %c0_i32_0 = arith.constant 0 : i32
    return %arg0, %c0_i32 : i32, i32
  }
}

</mosaic_0001>

<bundles_post_ra>
// kernel: tpu_custom_call.1
= control target key start
LH: loop header
LB: loop body
LE: loop exit
PB: predicated region body
PF: predicated region fallthrough
CT: control target
= control target key end

     0   :  { %9 = vsyncpa [#allocation3], 0  ;;  %s1351_s0 = inlined_call_operand.hbm [shape: f32[16,128], index: 0, kind: input, shape index: {}]   ;;  %s1352_s1 = inlined_call_operand.hbm [shape: f32[128,128], index: 1, kind: input, shape index: {}]   ;;  %s1353_s2 = inlined_call_operand.hbm [shape: f32[128,128], index: 2, kind: input, shape index: {}]   ;;  %s1354_s3 = inlined_call_operand.hbm [shape: f32[128,128], index: 3, kind: input, shape index: {}]   ;;  %s1355_s4 = inlined_call_operand.hbm [shape: f32[16,128], index: 4, kind: output, shape index: {}]  }
   0x1   :  { %11 = vsyncpa [#allocation3 + $0x1], 0 }
   0x2   :  { %12 = vsyncpa [#allocation6], 0 }
   0x3   :  { %13 = vsyncpa [#allocation9], 0 }
   0x4   :  { %14 = vsyncpa [#allocation4], 0 }
   0x5   :  { %16 = vsyncpa [#allocation4 + $0x1], 0  ;;  %s1101_s15 = smov 0   ;;  %s1103_s16 = smov 0  }
   0x6   :  { %s1105_s17 = smov 0   ;;  %s1107_s18 = smov 0  }
   0x7 LB: > { %s1122_s19 = sadd.s32 4294967295, %s1065_s18   ;;  %s632_s20 = sadd.s32 4294967294, %s1065_s18   ;;  %s1065_s18 = sphi %s1107_s18, %s1379_s18   ;;  %s1061_s17 = sphi %s1105_s17, %s1378_s17   ;;  %s1057_s16 = sphi %s1103_s16, %s1377_s16   ;;  %s1053_s15 = sphi %s1101_s15, %s1376_s15  }
   0x8   : > { %p42_p0 = scmp.ne.s32.totalorder %s1057_s16, %s1053_s15  ;;  %p1356_p1 = scmp.eq.s32.totalorder %s1122_s19, 0 }
   0x9   : > { %p135_p3 = scmp.eq.s32.totalorder %s632_s20, 1  ;;  %p633_p5 = scmp.ge.s32.totalorder %s1065_s18, 1 }
   0xa   : > { %p1131_p4 = por %p1356_p1, %p42_p0  ;;  %p142_p7 = scmp.lt.s32.totalorder %s1065_s18, 3 }
   0xb   : > { %p1136_p6 = por %p135_p3, %p42_p0  ;;  %s1067_s24 = smov [#allocation5]  }
   0xc   : > { %s1360_s21 = scalar_select %p1131_p4, 1, 0 }
   0xd   : > { %s1361_s22 = scalar_select %p1136_p6, 1, 0 }
   0xe   : > { %p1141_p8 = pnand %p633_p5, %p142_p7  ;;  %s154_s25 = sshll.u32 %s1067_s24, 4  ;;  %s155_s25 = int_to_ptr.vmem [resolvable:$true] %s154_s25 }
   0xf   : > { %s1068_s27 = smov [#allocation7]   ;;  %s1069_s29 = smov [#allocation8]  }
  0x10   : > { %s1362_s23 = scalar_select %p1141_p8, 1, 0 }
  0x11   : > { %p822_p9 = pneg %p1141_p8  ;;  %s167_s28 = sshll.u32 %s1068_s27, 4  ;;  %s168_s28 = int_to_ptr.vmem [resolvable:$true] %s167_s28 }
  0x12   : > { %s180_s30 = sshll.u32 %s1069_s29, 4  ;;  %s898_s5 = scalar_lea.vmem %s155_s25, 2048  ;;  %s181_s30 = int_to_ptr.vmem [resolvable:$true] %s180_s30 }
  0x13   : > { %p1150_p11 = pnand %p822_p9, %p1356_p1  ;;  %p899_p13 = scmp.ne.s32.totalorder %s155_s25, %s898_s5 }
  0x14   : > { %p906_p5 = scmp.lt.s32.totalorder %s155_s25, %s155_s25  ;;  %p907_p7 = scmp.lt.s32.totalorder %s898_s5, %s898_s5 }
  0x15   : > { %p889_p12 = pneg %p1150_p11 }
  0x16   : > { %p908_p9 = por %p907_p7, %p906_p5 }
  0x17   : > { %p901_p0 = pnand %p899_p13, %p889_p12 }
  0x19   : > { %p902_p3 = pneg %p901_p0 }
  0x1b   : > { %p909_p10 = pnand %p908_p9, %p902_p3 }
  0x1d   : > { %912 = shalt.err (!%p909_p10)
}
  0x1e   : > { %s1070_s6 = smov 128   ;;  %s1071_s7 = smov 8  }
  0x1f   : > { %825 = dma.hbm_to_vmem [thread:$0]  (!%p1150_p11), %s1352_s1, 2048, %s155_s25, [#allocation6], %s1070_s6, %s1070_s6, %s1071_s7  }
  0x20   : > { %s924_s10 = scalar_lea.vmem %s168_s28, 2048  ;;  %p932_p2 = scmp.lt.s32.totalorder %s168_s28, %s168_s28 }
  0x21   : > { %p925_p1 = scmp.ne.s32.totalorder %s168_s28, %s924_s10  ;;  %p933_p6 = scmp.lt.s32.totalorder %s924_s10, %s924_s10 }
  0x23   : > { %p927_p13 = pnand %p925_p1, %p889_p12  ;;  %p934_p5 = por %p933_p6, %p932_p2 }
  0x25   : > { %p928_p0 = pneg %p927_p13 }
  0x27   : > { %p935_p3 = pnand %p934_p5, %p928_p0 }
  0x29   : > { %938 = shalt.err (!%p935_p3)
}
  0x2a   : > { %828 = dma.hbm_to_vmem [thread:$0]  (!%p1150_p11), %s1353_s2, 2048, %s168_s28, [#allocation6], %s1070_s6, %s1070_s6, %s1071_s7  }
  0x2b   : > { %s950_s13 = scalar_lea.vmem %s181_s30, 2048  ;;  %p958_p9 = scmp.lt.s32.totalorder %s181_s30, %s181_s30 }
  0x2c   : > { %p951_p10 = scmp.ne.s32.totalorder %s181_s30, %s950_s13  ;;  %p959_p13 = scmp.lt.s32.totalorder %s950_s13, %s950_s13 }
  0x2e   : > { %p953_p7 = pnand %p951_p10, %p889_p12  ;;  %p960_p4 = por %p959_p13, %p958_p9 }
  0x30   : > { %p954_p1 = pneg %p953_p7 }
  0x32   : > { %p961_p2 = pnand %p960_p4, %p954_p1 }
  0x34   : > { %964 = shalt.err (!%p961_p2)
}
  0x35   : > { %831 = dma.hbm_to_vmem [thread:$0]  (!%p1150_p11), %s1354_s3, 2048, %s181_s30, [#allocation9], %s1070_s6, %s1070_s6, %s1071_s7  }
  0x36   : > { %s1181_s24 = sadd.s32 1, %s1065_s18   ;;  %s29_s26 = sadd.s32 1, %s1061_s17 }
  0x37   : > { %s26_s25 = ssub.s32 %s1065_s18, %s1181_s24  ;;  %p36_p6 = scmp.ne.s32.totalorder %s1061_s17, %s1057_s16 }
  0x38   : > { %p27_p4 = scmp.eq.s32.totalorder %s26_s25, 0  ;;  %p37_p12 = scmp.eq.s32.totalorder %s1065_s18, 0 }
  0x39   : > { %p843_p0 = scmp.lt.s32.totalorder %s1065_s18, 2  ;;  %p1364_p3 = scmp.eq.s32.totalorder %s1122_s19, 1 }
  0x3a   : > { %s1191_s27 = scalar_select %p27_p4, %s1061_s17, %s29_s26  }
  0x3b   : > { %p38_p5 = por %p37_p12, %p36_p6  ;;  %p1195_p10 = por %p1364_p3, %p36_p6 }
  0x3c   : > { %s194_s29 = sand.u32 1, %s1061_s17   ;;  %s639_s5 = sshll.u32 %s1065_s18, 7 }
  0x3d   : > { %s1365_s28 = scalar_select %p1195_p10, 1, 0 }
  0x3e   : > { %s638_s30 = sshll.u32 %s194_s29, 3  ;;  %s1204_s8 = scalar_lea.hbm %s1351_s0, %s639_s5 }
  0x3f   : > { %s198_s9 = scalar_lea.vmem [#allocation2], %s638_s30  ;;  %p1206_p11 = pnand %p843_p0, %p38_p5 }
  0x40   : > { %s205_s10 = sshll.u32 %s198_s9, 4  ;;  %s195_s12 = scalar_lea.sflag [#allocation3], %s194_s29  ;;  %s206_s10 = int_to_ptr.vmem [resolvable:$true] %s205_s10 }
  0x41   : > { %s965_s13 = scalar_lea.hbm %s1204_s8, 128  ;;  %p967_p1 = pneg %p1206_p11 }
  0x42   : > { %p966_p7 = scmp.ne.s32.totalorder %s1204_s8, %s965_s13  ;;  %s970_s25 = scalar_lea.hbm %s1351_s0, 256 }
  0x43   : > { %p971_p2 = scmp.lt.s32.totalorder %s1204_s8, %s1351_s0  ;;  %p972_p4 = scmp.lt.s32.totalorder %s970_s25, %s965_s13 }
  0x44   : > { %p968_p9 = pnand %p967_p1, %p966_p7 }
  0x45   : > { %p973_p6 = por %p972_p4, %p971_p2 }
  0x46   : > { %p969_p13 = pneg %p968_p9 }
  0x48   : > { %p974_p12 = pnand %p973_p6, %p969_p13 }
  0x4a   : > { %977 = shalt.err (!%p974_p12)
}
  0x4b   : > { %s978_s30 = scalar_lea.vmem %s206_s10, 128  ;;  %s1072_s29 = smov [#allocation2]  }
  0x4c   : > { %p979_p0 = scmp.ne.s32.totalorder %s206_s10, %s978_s30  ;;  %s983_s6 = sshll.u32 %s1072_s29, 4  ;;  %s984_s6 = int_to_ptr.vmem [resolvable:$false] %s983_s6 }
  0x4d   : > { %s985_s7 = scalar_lea.vmem %s984_s6, 256  ;;  %p986_p7 = scmp.lt.s32.totalorder %s206_s10, %s984_s6 }
  0x4e   : > { %p981_p5 = pnand %p979_p0, %p967_p1  ;;  %p987_p9 = scmp.lt.s32.totalorder %s985_s7, %s978_s30 }
  0x50   : > { %p982_p3 = pneg %p981_p5  ;;  %p988_p10 = por %p987_p9, %p986_p7 }
  0x52   : > { %p989_p8 = pnand %p988_p10, %p982_p3 }
  0x54   : > { %992 = shalt.err (!%p989_p8)
}
  0x55   : > { %835 = dma.hbm_to_vmem [thread:$0]  (!%p1206_p11), %s1204_s8, 128, %s206_s10, %s195_s12  }
  0x56   : > { %p1367_p13 = scmp.ne.s32.totalorder %s1362_s23, 0 }
  0x57   : > { %s1227_s9 = sand.u32 (!%p1367_p13), 1, %s1057_s16   ;;  %p1368_p8 = scmp.ne.s32.totalorder (!%p1367_p13), %s1360_s21, 0 }
  0x58   : > { %214 = sbr.rel (%p1367_p13) target bundleno = 731 (0x2db), region = 36  ;;  %s641_s13 = sshll.u32 (!%p1367_p13), %s1227_s9, 3 }
  0x59   : > { %s217_s14 = scalar_lea.sflag (!%p1367_p13), [#allocation3], %s1227_s9  ;;  %s1233_s20 = scalar_lea.vmem (!%p1367_p13), [#allocation2], %s641_s13 }
  0x5d   : > { %1036 = dma.done.wait (%p1368_p8), %s217_s14, 128  }
  0x5e   : > { %1038 = vsyncadd (%p1368_p8), %s217_s14, 4294967168  ;;  %p1369_p10 = scmp.eq.s32.totalorder %s1122_s19, 0 }
  0x60   : > { %1040 = dma.done.wait (%p1369_p10), [#allocation6], 4096   ;;  %p1370_p11 = pmov %p1369_p10 }
  0x61   : > { %p1371_p1 = pmov %p1369_p10 }
  0x62   : > { %1042 = vsyncadd (%p1370_p11), [#allocation6], 4294963200 }
  0x63   : > { %1044 = dma.done.wait (%p1371_p1), [#allocation9], 2048   ;;  %p1372_p2 = pmov %p1371_p1 }
  0x64   : > { %v1073_v0 = vmov 0.0   ;;  %vm1074_vm0 = vmmov 0   ;;  %v273_v1 = vld [vmem:[#allocation5 + $0x78] sm:$0xff]  ;;  %v272_v2 = vld [vmem:[#allocation5 + $0x70] sm:$0xff]  ;;  %v271_v3 = vld [vmem:[#allocation5 + $0x68] sm:$0xff]  ;;  %s256_s21 = scalar_lea.vmem [#allocation10], %s641_s13 }
  0x65   : > { %1046 = vsyncadd (%p1372_p2), [#allocation9], 4294965248  ;;  %701 = vmatprep.subr.mxu0 %v1073_v0  ;;  %733 = vmatprep.mubr.msk.f32.mxu0 %vm1074_vm0, %v1073_v0  ;;  %v270_v4 = vld [vmem:[#allocation5 + $0x60] sm:$0xff]  ;;  %v360_v5 = vld [vmem:[#allocation7 + $0x78] sm:$0xff]  ;;  %s533_s23 = sshll.u32 %s256_s21, 4  ;;  %s647_s8 = sshll.u32 %s1122_s19, 7  ;;  %s1305_s23 = int_to_ptr.vmem [resolvable:$true] %s533_s23 }
  0x66   : > { %736 = vmatprep.subr.mxu1 %v1073_v0  ;;  %768 = vmatprep.mubr.msk.f32.mxu1 %vm1074_vm0, %v1073_v0  ;;  %v269_v6 = vld [vmem:[#allocation5 + $0x58] sm:$0xff]  ;;  %v359_v7 = vld [vmem:[#allocation7 + $0x70] sm:$0xff]  ;;  %v358_v8 = vld [vmem:[#allocation7 + $0x68] sm:$0xff]  ;;  %s1310_s12 = scalar_lea.hbm %s1355_s4, %s647_s8  ;;  %s520_s25 = scalar_lea.sflag [#allocation4], %s1227_s9 }
  0x67   : > { %702 = vmatpush3.msra.mxu0 %v273_v1  ;;  %737 = vmatpush3.msra.mxu1 %v360_v5  ;;  %v268_v9 = vld [vmem:[#allocation5 + $0x50] sm:$0xff]  ;;  %v357_v10 = vld [vmem:[#allocation7 + $0x60] sm:$0xff]  ;;  %v267_v11 = vld [vmem:[#allocation5 + $0x48] sm:$0xff]  ;;  %s993_s26 = scalar_lea.vmem %s1305_s23, 128  ;;  %p1373_p6 = scmp.ne.s32.totalorder %s1365_s28, 0 }
  0x68   : > { %703 = vmatprep.subr.mxu0 %v1073_v0  ;;  %738 = vmatprep.subr.mxu1 %v1073_v0  ;;  %v356_v12 = vld [vmem:[#allocation7 + $0x58] sm:$0xff]  ;;  %v266_v13 = vld [vmem:[#allocation5 + $0x40] sm:$0xff]  ;;  %v355_v14 = vld [vmem:[#allocation7 + $0x50] sm:$0xff]  ;;  %p994_p4 = scmp.ne.s32.totalorder %s1305_s23, %s993_s26  ;;  %s1075_s19 = smov [#allocation10]  }
  0x69   : > { %704 = vmatpush3.msra.mxu0 %v272_v2  ;;  %739 = vmatpush3.msra.mxu1 %v359_v7  ;;  %v265_v15 = vld [vmem:[#allocation5 + $0x38] sm:$0xff]  ;;  %v354_v16 = vld [vmem:[#allocation7 + $0x48] sm:$0xff]  ;;  %v264_v17 = vld [vmem:[#allocation5 + $0x30] sm:$0xff]  ;;  %s997_s5 = sshll.u32 %s1075_s19, 4  ;;  %s998_s5 = int_to_ptr.vmem [resolvable:$false] %s997_s5 }
  0x6a   : > { %705 = vmatprep.subr.mxu0 %v1073_v0  ;;  %740 = vmatprep.subr.mxu1 %v1073_v0  ;;  %v353_v18 = vld [vmem:[#allocation7 + $0x40] sm:$0xff]  ;;  %v263_v19 = vld [vmem:[#allocation5 + $0x28] sm:$0xff]  ;;  %v352_v20 = vld [vmem:[#allocation7 + $0x38] sm:$0xff]  ;;  %p995_p12 = pnand %p994_p4, %p1373_p6  ;;  %s999_s30 = scalar_lea.vmem %s998_s5, 256 }
  0x6b   : > { %706 = vmatpush3.msra.mxu0 %v271_v3  ;;  %741 = vmatpush3.msra.mxu1 %v358_v8  ;;  %v262_v21 = vld [vmem:[#allocation5 + $0x20] sm:$0xff]  ;;  %v351_v22 = vld [vmem:[#allocation7 + $0x30] sm:$0xff]  ;;  %v261_v23 = vld [vmem:[#allocation5 + $0x18] sm:$0xff]  ;;  %p1000_p5 = scmp.lt.s32.totalorder %s1305_s23, %s998_s5  ;;  %p1001_p3 = scmp.lt.s32.totalorder %s999_s30, %s993_s26 }
  0x6c   : > { %707 = vmatprep.subr.mxu0 %v1073_v0  ;;  %742 = vmatprep.subr.mxu1 %v1073_v0  ;;  %v350_v24 = vld [vmem:[#allocation7 + $0x28] sm:$0xff]  ;;  %v260_v25 = vld [vmem:[#allocation5 + $0x10] sm:$0xff]  ;;  %v349_v26 = vld [vmem:[#allocation7 + $0x20] sm:$0xff]  ;;  %p996_p0 = pneg %p995_p12 }
  0x6d   : > { %708 = vmatpush3.msra.mxu0 %v270_v4  ;;  %743 = vmatpush3.msra.mxu1 %v357_v10  ;;  %v259_v27 = vld [vmem:[#allocation5 + $0x8] sm:$0xff]  ;;  %v348_v28 = vld [vmem:[#allocation7 + $0x18] sm:$0xff]  ;;  %v258_v29 = vld [vmem:[#allocation5] sm:$0xff]  ;;  %p1002_p7 = por %p1001_p3, %p1000_p5 }
  0x6e   : > { %709 = vmatprep.subr.mxu0 %v1073_v0  ;;  %744 = vmatprep.subr.mxu1 %v1073_v0  ;;  %v257_v30 = vld [vmem:[%s1233_s20] sm:$0xff]  ;;  %v346_v32 = vld [vmem:[#allocation7 + $0x8] sm:$0xff]  ;;  %v345_v33 = vld [vmem:[#allocation7] sm:$0xff] }
  0x6f   : > { %710 = vmatpush3.msra.mxu0 %v269_v6  ;;  %745 = vmatpush3.msra.mxu1 %v356_v12  ;;  %v347_v31 = vld [vmem:[#allocation7 + $0x10] sm:$0xff]  ;;  %v447_v34 = vld [vmem:[#allocation8 + $0x78] sm:$0xff]  ;;  %v445_v36 = vld [vmem:[#allocation8 + $0x68] sm:$0xff]  ;;  %p1003_p9 = pnand %p1002_p7, %p996_p0 }
  0x70   : > { %711 = vmatprep.subr.mxu0 %v1073_v0  ;;  %746 = vmatprep.subr.mxu1 %v1073_v0  ;;  %v446_v35 = vld [vmem:[#allocation8 + $0x70] sm:$0xff]  ;;  %v444_v37 = vld [vmem:[#allocation8 + $0x60] sm:$0xff]  ;;  %v443_v38 = vld [vmem:[#allocation8 + $0x58] sm:$0xff] }
  0x71   : > { %712 = vmatpush3.msra.mxu0 %v268_v9  ;;  %747 = vmatpush3.msra.mxu1 %v355_v14  ;;  %v442_v39 = vld [vmem:[#allocation8 + $0x50] sm:$0xff]  ;;  %v441_v40 = vld [vmem:[#allocation8 + $0x48] sm:$0xff]  ;;  %v440_v41 = vld [vmem:[#allocation8 + $0x40] sm:$0xff] }
  0x72   : > { %713 = vmatprep.subr.mxu0 %v1073_v0  ;;  %748 = vmatprep.subr.mxu1 %v1073_v0  ;;  %v439_v42 = vld [vmem:[#allocation8 + $0x38] sm:$0xff]  ;;  %v438_v43 = vld [vmem:[#allocation8 + $0x30] sm:$0xff]  ;;  %v437_v44 = vld [vmem:[#allocation8 + $0x28] sm:$0xff] }
  0x73   : > { %714 = vmatpush3.msra.mxu0 %v267_v11  ;;  %749 = vmatpush3.msra.mxu1 %v354_v16  ;;  %v436_v45 = vld [vmem:[#allocation8 + $0x20] sm:$0xff]  ;;  %v435_v46 = vld [vmem:[#allocation8 + $0x18] sm:$0xff]  ;;  %v434_v47 = vld [vmem:[#allocation8 + $0x10] sm:$0xff] }
  0x74   : > { %715 = vmatprep.subr.mxu0 %v1073_v0  ;;  %750 = vmatprep.subr.mxu1 %v1073_v0  ;;  %v433_v51 = vld [vmem:[#allocation8 + $0x8] sm:$0xff]  ;;  %v432_v52 = vld [vmem:[#allocation8] sm:$0xff] }
  0x75   : > { %716 = vmatpush3.msra.mxu0 %v266_v13  ;;  %751 = vmatpush3.msra.mxu1 %v353_v18 }
  0x76   : > { %717 = vmatprep.subr.mxu0 %v1073_v0  ;;  %752 = vmatprep.subr.mxu1 %v1073_v0 }
  0x77   : > { %718 = vmatpush3.msra.mxu0 %v265_v15  ;;  %753 = vmatpush3.msra.mxu1 %v352_v20 }
  0x78   : > { %719 = vmatprep.subr.mxu0 %v1073_v0  ;;  %754 = vmatprep.subr.mxu1 %v1073_v0 }
  0x79   : > { %720 = vmatpush3.msra.mxu0 %v264_v17  ;;  %755 = vmatpush3.msra.mxu1 %v351_v22 }
  0x7a   : > { %721 = vmatprep.subr.mxu0 %v1073_v0  ;;  %756 = vmatprep.subr.mxu1 %v1073_v0 }
  0x7b   : > { %722 = vmatpush3.msra.mxu0 %v263_v19  ;;  %757 = vmatpush3.msra.mxu1 %v350_v24 }
  0x7c   : > { %723 = vmatprep.subr.mxu0 %v1073_v0  ;;  %758 = vmatprep.subr.mxu1 %v1073_v0 }
  0x7d   : > { %724 = vmatpush3.msra.mxu0 %v262_v21  ;;  %759 = vmatpush3.msra.mxu1 %v349_v26 }
  0x7e   : > { %725 = vmatprep.subr.mxu0 %v1073_v0  ;;  %760 = vmatprep.subr.mxu1 %v1073_v0 }
  0x7f   : > { %726 = vmatpush3.msra.mxu0 %v261_v23  ;;  %761 = vmatpush3.msra.mxu1 %v348_v28 }
  0x80   : > { %727 = vmatprep.subr.mxu0 %v1073_v0  ;;  %762 = vmatprep.subr.mxu1 %v1073_v0 }
  0x81   : > { %728 = vmatpush3.msra.mxu0 %v260_v25  ;;  %763 = vmatpush3.msra.mxu1 %v347_v31 }
  0x82   : > { %729 = vmatprep.subr.mxu0 %v1073_v0  ;;  %764 = vmatprep.subr.mxu1 %v1073_v0 }
  0x83   : > { %730 = vmatpush3.msra.mxu0 %v259_v27  ;;  %765 = vmatpush3.msra.mxu1 %v346_v32 }
  0x84   : > { %731 = vmatprep.subr.mxu0 %v1073_v0  ;;  %766 = vmatprep.subr.mxu1 %v1073_v0 }
  0x85   : > { %732 = vmatpush3.msra.mxu0 %v258_v29  ;;  %767 = vmatpush3.msra.mxu1 %v345_v33 }
  0x86   : > { %734 = vmatmul.mubr.f32.vlgmr.msra.gmra.mxu0 %v257_v30  ;;  %771 = vmatprep.subr.mxu0 %v1073_v0 }
  0x87   : > { %803 = vmatprep.mubr.msk.f32.mxu0 %vm1074_vm0, %v1073_v0  ;;  %772 = vmatpush3.msra.mxu0 %v447_v34 }
  0x88   : > { %773 = vmatprep.subr.mxu0 %v1073_v0 }
  0x89   : > { %774 = vmatpush3.msra.mxu0 %v446_v35 }
  0x8a   : > { %775 = vmatprep.subr.mxu0 %v1073_v0 }
  0x8b   : > { %776 = vmatpush3.msra.mxu0 %v445_v36 }
  0x8c   : > { %777 = vmatprep.subr.mxu0 %v1073_v0 }
  0x8d   : > { %778 = vmatpush3.msra.mxu0 %v444_v37 }
  0x8e   : > { %779 = vmatprep.subr.mxu0 %v1073_v0 }
  0x8f   : > { %780 = vmatpush3.msra.mxu0 %v443_v38 }
  0x90   : > { %781 = vmatprep.subr.mxu0 %v1073_v0 }
  0x91   : > { %782 = vmatpush3.msra.mxu0 %v442_v39 }
  0x92   : > { %783 = vmatprep.subr.mxu0 %v1073_v0 }
  0x93   : > { %784 = vmatpush3.msra.mxu0 %v441_v40 }
  0x94   : > { %785 = vmatprep.subr.mxu0 %v1073_v0 }
  0x95   : > { %786 = vmatpush3.msra.mxu0 %v440_v41 }
  0x96   : > { %787 = vmatprep.subr.mxu0 %v1073_v0 }
  0x97   : > { %788 = vmatpush3.msra.mxu0 %v439_v42 }
  0x98   : > { %789 = vmatprep.subr.mxu0 %v1073_v0 }
  0x99   : > { %790 = vmatpush3.msra.mxu0 %v438_v43 }
  0x9a   : > { %791 = vmatprep.subr.mxu0 %v1073_v0 }
  0x9b   : > { %792 = vmatpush3.msra.mxu0 %v437_v44 }
  0x9c   : > { %793 = vmatprep.subr.mxu0 %v1073_v0 }
  0x9d   : > { %794 = vmatpush3.msra.mxu0 %v436_v45 }
  0x9e   : > { %795 = vmatprep.subr.mxu0 %v1073_v0 }
  0x9f   : > { %796 = vmatpush3.msra.mxu0 %v435_v46 }
  0xa0   : > { %797 = vmatprep.subr.mxu0 %v1073_v0 }
  0xa1   : > { %798 = vmatpush3.msra.mxu0 %v434_v47 }
  0xa2   : > { %799 = vmatprep.subr.mxu0 %v1073_v0 }
  0xa3   : > { %800 = vmatpush3.msra.mxu0 %v433_v51 }
  0xa4   : > { %801 = vmatprep.subr.mxu0 %v1073_v0 }
  0xa5   : > { %802 = vmatpush3.msra.mxu0 %v432_v52 }
 0x146   : > { %v340_v48 = vpop.f32.mrf.mxu0 }
 0x147   : > { %v344_v49 = vmax.f32 %v340_v48, 0.0 }
 0x148   : > { %v735_v50 = vpop.f32.mrf.mxu0 }
 0x149   : > { %769 = vmatmul.mubr.f32.vlgmr.msra.gmra.mxu1 %v344_v49 }
 0x209   : > { %v427_v53 = vpop.f32.mrf.mxu1 }
 0x20a   : > { %v431_v54 = vmax.f32 %v427_v53, 0.0 }
 0x20b   : > { %v770_v55 = vpop.f32.mrf.mxu1 }
 0x20c   : > { %804 = vmatmul.mubr.f32.vlgmr.msra.gmra.mxu0 %v431_v54 }
 0x2cc   : > { %v514_v56 = vpop.f32.mrf.mxu0 }
 0x2cd   : > { %518 = vst [vmem:[%s256_s21] sm:$0xff] %v514_v56 }
 0x2ce   : > { %v805_v57 = vpop.f32.mrf.mxu0 }
 0x2cf   : > { %1006 = shalt.err (!%p1003_p9)
}
 0x2d0   : > { %s1007_s29 = scalar_lea.hbm %s1310_s12, 128  ;;  %s1011_s9 = scalar_lea.hbm %s1355_s4, 256 }
 0x2d1   : > { %p1008_p13 = scmp.ne.s32.totalorder %s1310_s12, %s1007_s29  ;;  %p1012_p11 = scmp.lt.s32.totalorder %s1310_s12, %s1355_s4 }
 0x2d2   : > { %p1013_p1 = scmp.lt.s32.totalorder %s1011_s9, %s1007_s29 }
 0x2d3   : > { %p1009_p8 = pnand %p1008_p13, %p1373_p6 }
 0x2d4   : > { %p1014_p2 = por %p1013_p1, %p1012_p11 }
 0x2d5   : > { %p1010_p10 = pneg %p1009_p8 }
 0x2d7   : > { %p1015_p4 = pnand %p1014_p2, %p1010_p10 }
 0x2d9   : > { %1018 = shalt.err (!%p1015_p4)
}
 0x2da   : > { %820 = dma.vmem_to_hbm [thread:$0]  (%p1373_p6), %s1305_s23, 128, %s1310_s12, %s520_s25  }
 0x2db PF: > { %s545_s20 = sand.u32 1, %s1053_s15   ;;  %p1374_p12 = scmp.ne.s32.totalorder %s1361_s22, 0 }
 0x2dc   : > { %p1375_p0 = scmp.ge.s32.totalorder %s1065_s18, 2  ;;  %s546_s21 = scalar_lea.sflag [#allocation4], %s545_s20 }
 0x2de   : > { %p837_p5 = pnand %p1375_p0, %p1374_p12 }
 0x2e0   : > { %p838_p3 = pneg %p837_p5 }
 0x2e2   : > { %1048 = dma.done.wait (%p838_p3), %s546_s21, 128  }
 0x2e3   : > { %1050 = vsyncadd (%p838_p3), %s546_s21, 4294967168  ;;  %p19_p7 = scmp.ge.s32.totalorder %s1181_s24, 4   ;;  %s1376_s15 = smov %s1057_s16 }
 0x2e4   : > { %s1377_s16 = smov %s1061_s17  ;;  %s1378_s17 = smov %s1191_s27 }
 0x2e5   : > { %s1379_s18 = smov %s1181_s24  ;;  %21 = sbr.rel (!%p19_p7) target bundleno = 7 (0x7), region = 93 }
 0x2ea   :  { %551 = vsyncpa [#allocation3], 1 }
 0x2eb   :  { %553 = vsyncpa [#allocation3 + $0x1], 1 }
 0x2ec   :  { %554 = vsyncpa [#allocation6], 1 }
 0x2ed   :  { %555 = vsyncpa [#allocation9], 1 }
 0x2ee   :  { %556 = vsyncpa [#allocation4], 1 }
 0x2ef   :  { %558 = vsyncpa [#allocation4 + $0x1], 1 }

</bundles_post_ra>
